<compile_context>
chip_gen: v5e
topology: v5e:2x2
jax: 0.10.0
libtpu: 0.0.40
codegen_flags: <defaults>
</compile_context>

<pallas_src>
import functools

import jax
import jax.numpy as jnp
from jax import lax
from jax.experimental import pallas as pl
from jax.experimental.pallas import tpu as pltpu

LANE = 128      # lane width (last dim of a vreg)
SUBLANE = 8     # f32 sublane count
NP = LANE       # fused head output width: [logits | value | zero pad]


def _round_up(x, m):
    return -(-x // m) * m


def _cdiv(a, b):
    return -(-a // b)


# ----------------------------------------------------------------------------
# Kernel
# ----------------------------------------------------------------------------
def mlp_kernel(x_ref, p_ref, out_ref, *, n_actions):
    """x_ref: (tb, obs); p_ref: (R, HP) packed params; out_ref: (tb, 128)."""
    obs = x_ref.shape[1]
    hp = p_ref.shape[1]                   # padded hidden width (>= 128)
    np_ = out_ref.shape[1]                # 128
    op = _round_up(obs, SUBLANE)          # row offset of w2 in the slab
    r_w2 = op
    r_wh = op + hp
    r_b = op + 2 * hp

    # Static ref slices into the packed parameter slab (zero-cost views;
    # starts are sublane-aligned, width is the full lane extent).
    x = x_ref[...]
    w1 = p_ref[0:obs, :]                  # (obs, HP)  cols >= hid are zero
    w2 = p_ref[r_w2:r_w2 + hp, :]         # (HP, HP)
    whv = p_ref[r_wh:r_wh + hp, :]        # (HP, HP)   [wh | wv | 0-pad]
    b1 = p_ref[r_b + 0:r_b + 1, :]        # (1, HP)
    b2 = p_ref[r_b + 1:r_b + 2, :]        # (1, HP)
    bh = p_ref[r_b + 2:r_b + 3, :]        # (1, HP)    [bh | bv | 0-pad]

    # x1 = tanh(affine1(x));  padded lanes stay exactly 0 (tanh(0) = 0).
    x1 = jnp.tanh(jnp.dot(x, w1, preferred_element_type=jnp.float32) + b1)

    # h = tanh(affine2(x1) + x1)
    h = jnp.tanh(
        jnp.dot(x1.astype(w2.dtype), w2, preferred_element_type=jnp.float32)
        + b2 + x1)

    # Fused heads: one matmul yields [logits | value | pad]   (tb, HP)
    combined = (jnp.dot(h.astype(whv.dtype), whv,
                        preferred_element_type=jnp.float32) + bh)
    if hp > np_:                          # static: padded cols beyond 128 are 0
        combined = combined[:, :np_]

    col = lax.broadcasted_iota(jnp.int32, combined.shape, 1)
    is_logit = col < n_actions
    is_value = col == n_actions
    neg_inf = jnp.float32(-jnp.inf)

    # Masked, max-shifted log_softmax over the first n_actions lanes only.
    # NOTE: keep the mask as a select (jnp.where) -- exp() must see -inf on the
    # value/pad lanes (exp(-inf) = 0), not an arithmetic `* mask`, or large
    # value lanes could overflow/NaN the row sum.
    masked_logits = jnp.where(is_logit, combined, neg_inf)
    m = jnp.max(masked_logits, axis=-1, keepdims=True)
    shifted = combined - m
    p = jnp.exp(jnp.where(is_logit, shifted, neg_inf))       # 0 off-logit lanes
    lse = jnp.log(jnp.sum(p, axis=-1, keepdims=True))
    log_probs = shifted - lse

    # Single lane-dense store: [log_probs | value | zeros]
    out_ref[...] = jnp.where(
        is_logit, log_probs,
        jnp.where(is_value, combined, 0.0)).astype(out_ref.dtype)


# ----------------------------------------------------------------------------
# One-time parameter repacking: single pre-padded (R, HP) slab
#   rows [0, OP)            : w1   (obs x hid, zero-padded)
#   rows [OP, OP+HP)        : w2   (hid x hid, zero-padded)
#   rows [OP+HP, OP+2HP)    : [wh | wv | 0]  (hid x 128, zero-padded)
#   rows [OP+2HP, OP+2HP+8) : b1 / b2 / [bh | bv | 0]
# ----------------------------------------------------------------------------
def pack_params(params, compute_dtype=jnp.float32):
    w1 = jnp.asarray(params["w1"], jnp.float32)        # (obs, hid)
    w2 = jnp.asarray(params["w2"], jnp.float32)        # (hid, hid)
    wh = jnp.asarray(params["wh"], jnp.float32)        # (hid, n_actions)
    wv = jnp.asarray(params["wv"], jnp.float32)        # (hid, 1)
    b1 = jnp.asarray(params["b1"], jnp.float32).reshape(-1)
    b2 = jnp.asarray(params["b2"], jnp.float32).reshape(-1)
    bh = jnp.asarray(params["bh"], jnp.float32).reshape(-1)
    bv = jnp.asarray(params["bv"], jnp.float32).reshape(-1)

    obs, hid = w1.shape
    n_actions = wh.shape[1]                             # Python int (static)
    assert n_actions + 1 <= NP, "fused head assumes n_actions + 1 <= 128"

    op = _round_up(obs, SUBLANE)
    hp = _round_up(hid, LANE)                           # >= 128, lane-dense
    r_b = op + 2 * hp
    rows = r_b + SUBLANE                                # multiple of 8

    slab = jnp.zeros((rows, hp), jnp.float32)
    slab = slab.at[:obs, :hid].set(w1)
    slab = slab.at[op:op + hid, :hid].set(w2)
    slab = slab.at[op + hp:op + hp + hid, :n_actions].set(wh)
    slab = slab.at[op + hp:op + hp + hid, n_actions:n_actions + 1].set(wv)
    slab = slab.at[r_b + 0, :hid].set(b1)
    slab = slab.at[r_b + 1, :hid].set(b2)
    slab = slab.at[r_b + 2, :n_actions].set(bh)
    slab = slab.at[r_b + 2, n_actions].set(bv[0])

    return slab.astype(compute_dtype), n_actions


# ----------------------------------------------------------------------------
# Wrapper
# ----------------------------------------------------------------------------
def mlp_forward(x, slab, *, n_actions, max_tb=1024):
    B, obs = x.shape
    R, hp = slab.shape
    compute_dtype = slab.dtype
    x = x.astype(compute_dtype)

    # Batch tiling: no padding, no round-up to a tile multiple.  Pallas clips
    # the ragged last block (row-wise computation => clipped rows are inert).
    # For B >= 9 we force >= 2 grid steps so the "parallel" axis can shard
    # across both TensorCores on v7x.
    if B <= SUBLANE:
        tb = B                                   # block == full array dims
    else:
        tb = min(max_tb, _round_up(_cdiv(B, 2), SUBLANE))
    grid = (_cdiv(B, tb),)

    itemsize = jnp.dtype(compute_dtype).itemsize
    cost = pl.CostEstimate(
        flops=int(2 * B * (obs * hp + hp * hp + hp * NP)),
        transcendentals=int(B * (2 * hp + n_actions + 1)),   # tanh, exp, log
        bytes_accessed=int(itemsize * (B * obs + R * hp) + 4 * B * NP),
    )

    out = pl.pallas_call(
        functools.partial(mlp_kernel, n_actions=n_actions),
        out_shape=jax.ShapeDtypeStruct((B, NP), jnp.float32),
        grid_spec=pltpu.PrefetchScalarGridSpec(
            num_scalar_prefetch=0,
            grid=grid,
            in_specs=[
                # x: batch-tiled
                pl.BlockSpec((tb, obs), lambda i: (i, 0)),
                # packed params: grid-invariant, VMEM-resident, single-buffered
                pl.BlockSpec((R, hp), lambda i: (0, 0),
                             pipeline_mode=pl.Buffered(1)),
            ],
            out_specs=pl.BlockSpec((tb, NP), lambda i: (i, 0)),
        ),
        compiler_params=pltpu.CompilerParams(
            dimension_semantics=("parallel",)),
        cost_estimate=cost,
    )(x, slab)

    a = out[:, :n_actions]                        # log-probs
    v = out[:, n_actions:n_actions + 1]           # value
    return a, v


# ----------------------------------------------------------------------------
# Parameter init (PyTorch-equivalent (in, out) storage), reference, main
# ----------------------------------------------------------------------------
def init_params(key, obs_shape, hid_size, n_actions):
    ks = jax.random.split(key, 8)
    scale = 0.1
    return {
        "w1": scale * jax.random.normal(ks[0], (obs_shape, hid_size), jnp.float32),
        "b1": scale * jax.random.normal(ks[1], (1, hid_size), jnp.float32),
        "w2": scale * jax.random.normal(ks[2], (hid_size, hid_size), jnp.float32),
        "b2": scale * jax.random.normal(ks[3], (1, hid_size), jnp.float32),
        "wh": scale * jax.random.normal(ks[4], (hid_size, n_actions), jnp.float32),
        "bh": scale * jax.random.normal(ks[5], (1, n_actions), jnp.float32),
        "wv": scale * jax.random.normal(ks[6], (hid_size, 1), jnp.float32),
        "bv": scale * jax.random.normal(ks[7], (1, 1), jnp.float32),
    }


def reference_forward(x, params):
    hi = lax.Precision.HIGHEST
    x1 = jnp.tanh(jnp.dot(x, params["w1"], precision=hi) + params["b1"])
    h = jnp.tanh(jnp.dot(x1, params["w2"], precision=hi) + params["b2"] + x1)
    logits = jnp.dot(h, params["wh"], precision=hi) + params["bh"]
    a = jax.nn.log_softmax(logits, axis=-1)
    v = jnp.dot(h, params["wv"], precision=hi) + params["bv"]
    return a, v


if __name__ == "__main__":
    B, OBS, HID, NACT = 2, 16, 32, 8
    key = jax.random.PRNGKey(0)
    kx, kx2, kp = jax.random.split(key, 3)
    params = init_params(kp, OBS, HID, NACT)
    slab, n_actions = pack_params(params)          # n_actions is a Python int

    fwd = jax.jit(mlp_forward, static_argnames=("n_actions", "max_tb"))

    # Small batch: single block equal to the full array dims.
    x = jax.random.normal(kx, (B, OBS), jnp.float32)
    a, v = fwd(x, slab, n_actions=n_actions)
    jax.block_until_ready((a, v))
    a_ref, v_ref = reference_forward(x, params)
    assert a.shape == (B, NACT) and v.shape == (B, 1)
    assert jnp.allclose(a, a_ref, atol=1e-4, rtol=1e-4), "log_softmax mismatch"
    assert jnp.allclose(v, v_ref, atol=1e-4, rtol=1e-4), "value head mismatch"

    # Ragged batch: exercises the multi-step grid + clipped last block path.
    B2 = 19
    x2 = jax.random.normal(kx2, (B2, OBS), jnp.float32)
    a2, v2 = fwd(x2, slab, n_actions=n_actions)
    jax.block_until_ready((a2, v2))
    a2_ref, v2_ref = reference_forward(x2, params)
    assert a2.shape == (B2, NACT) and v2.shape == (B2, 1)
    assert jnp.allclose(a2, a2_ref, atol=1e-4, rtol=1e-4), "ragged log_softmax mismatch"
    assert jnp.allclose(v2, v2_ref, atol=1e-4, rtol=1e-4), "ragged value mismatch"

    print("KERNEL_OK")
</pallas_src>

<mosaic_0001>
module attributes {stable_mosaic.version = 11 : i64} {
  func.func @mlp_kernel(%arg0: i32, %arg1: memref<2x16xf32, #tpu.memory_space<vmem>>, %arg2: memref<280x128xf32, #tpu.memory_space<vmem>>, %arg3: memref<2x128xf32, #tpu.memory_space<vmem>>) attributes {dimension_semantics = [#tpu.dimension_semantics<parallel>], iteration_bounds = array<i64: 1>, scalar_prefetch = 0 : i64, scratch_operands = 0 : i64, tpu.core_type = #tpu.core_type<tc>, window_params = [{transform_indices = @transform_0, window_bounds = array<i64: 2, 16>}, {pipeline_mode = #tpu.pipeline_mode<synchronous>, transform_indices = @transform_1, window_bounds = array<i64: 280, 128>}, {transform_indices = @transform_2, window_bounds = array<i64: 2, 128>}]} {
    %c0 = arith.constant 0 : index
    %c0_0 = arith.constant 0 : index
    %0 = vector.load %arg1[%c0, %c0_0] : memref<2x16xf32, #tpu.memory_space<vmem>>, vector<2x16xf32>
    %c0_1 = arith.constant 0 : index
    %c0_2 = arith.constant 0 : index
    %1 = vector.load %arg2[%c0_1, %c0_2] : memref<280x128xf32, #tpu.memory_space<vmem>>, vector<16x128xf32>
    %c16 = arith.constant 16 : index
    %c0_3 = arith.constant 0 : index
    %2 = vector.load %arg2[%c16, %c0_3] : memref<280x128xf32, #tpu.memory_space<vmem>>, vector<128x128xf32>
    %c144 = arith.constant 144 : index
    %c0_4 = arith.constant 0 : index
    %3 = vector.load %arg2[%c144, %c0_4] : memref<280x128xf32, #tpu.memory_space<vmem>>, vector<128x128xf32>
    %c272 = arith.constant 272 : index
    %c0_5 = arith.constant 0 : index
    %4 = vector.load %arg2[%c272, %c0_5] : memref<280x128xf32, #tpu.memory_space<vmem>>, vector<1x128xf32>
    %c273 = arith.constant 273 : index
    %c0_6 = arith.constant 0 : index
    %5 = vector.load %arg2[%c273, %c0_6] : memref<280x128xf32, #tpu.memory_space<vmem>>, vector<1x128xf32>
    %c274 = arith.constant 274 : index
    %c0_7 = arith.constant 0 : index
    %6 = vector.load %arg2[%c274, %c0_7] : memref<280x128xf32, #tpu.memory_space<vmem>>, vector<1x128xf32>
    %cst = arith.constant dense<0.000000e+00> : vector<2x128xf32>
    %7 = tpu.matmul %0, %1, %cst {dimension_numbers = #tpu.dot_dimension_numbers<[1], [0], [0], [1], [0, 0, 1, 1], [], []>} : vector<2x16xf32>, vector<16x128xf32>, vector<2x128xf32> -> vector<2x128xf32>
    %8 = vector.broadcast %4 : vector<1x128xf32> to vector<2x128xf32>
    %9 = arith.addf %7, %8 : vector<2x128xf32>
    %10 = math.tanh %9 : vector<2x128xf32>
    %cst_8 = arith.constant dense<0.000000e+00> : vector<2x128xf32>
    %11 = tpu.matmul %10, %2, %cst_8 {dimension_numbers = #tpu.dot_dimension_numbers<[1], [0], [0], [1], [0, 0, 1, 1], [], []>} : vector<2x128xf32>, vector<128x128xf32>, vector<2x128xf32> -> vector<2x128xf32>
    %12 = vector.broadcast %5 : vector<1x128xf32> to vector<2x128xf32>
    %13 = arith.addf %11, %12 : vector<2x128xf32>
    %14 = arith.addf %13, %10 : vector<2x128xf32>
    %15 = math.tanh %14 : vector<2x128xf32>
    %cst_9 = arith.constant dense<0.000000e+00> : vector<2x128xf32>
    %16 = tpu.matmul %15, %3, %cst_9 {dimension_numbers = #tpu.dot_dimension_numbers<[1], [0], [0], [1], [0, 0, 1, 1], [], []>} : vector<2x128xf32>, vector<128x128xf32>, vector<2x128xf32> -> vector<2x128xf32>
    %17 = vector.broadcast %6 : vector<1x128xf32> to vector<2x128xf32>
    %18 = arith.addf %16, %17 : vector<2x128xf32>
    %19 = tpu.iota {dimensions = array<i32: 1>} : vector<2x128xi32>
    %c8_i32 = arith.constant 8 : i32
    %20 = vector.broadcast %c8_i32 : i32 to vector<2x128xi32>
    %21 = arith.cmpi slt, %19, %20 : vector<2x128xi32>
    %c8_i32_10 = arith.constant 8 : i32
    %22 = vector.broadcast %c8_i32_10 : i32 to vector<2x128xi32>
    %23 = arith.cmpi eq, %19, %22 : vector<2x128xi32>
    %cst_11 = arith.constant 0xFF800000 : f32
    %24 = vector.broadcast %cst_11 : f32 to vector<2x128xf32>
    %25 = arith.select %21, %18, %24 : vector<2x128xi1>, vector<2x128xf32>
    %cst_12 = arith.constant dense<0xFF800000> : vector<2xf32>
    %26 = vector.multi_reduction <maximumf>, %25, %cst_12 [1] : vector<2x128xf32> to vector<2xf32>
    %27 = vector.shape_cast %26 : vector<2xf32> to vector<2x1xf32>
    %28 = vector.broadcast %27 : vector<2x1xf32> to vector<2x128xf32>
    %29 = arith.subf %18, %28 : vector<2x128xf32>
    %cst_13 = arith.constant 0xFF800000 : f32
    %30 = vector.broadcast %cst_13 : f32 to vector<2x128xf32>
    %31 = arith.select %21, %29, %30 : vector<2x128xi1>, vector<2x128xf32>
    %32 = math.exp %31 : vector<2x128xf32>
    %cst_14 = arith.constant dense<0.000000e+00> : vector<2xf32>
    %33 = vector.multi_reduction <add>, %32, %cst_14 [1] : vector<2x128xf32> to vector<2xf32>
    %34 = vector.shape_cast %33 : vector<2xf32> to vector<2x1xf32>
    %35 = math.log %34 : vector<2x1xf32>
    %36 = vector.broadcast %35 : vector<2x1xf32> to vector<2x128xf32>
    %37 = arith.subf %29, %36 : vector<2x128xf32>
    %cst_15 = arith.constant 0.000000e+00 : f32
    %38 = vector.broadcast %cst_15 : f32 to vector<2x128xf32>
    %39 = arith.select %23, %18, %38 : vector<2x128xi1>, vector<2x128xf32>
    %40 = arith.select %21, %37, %39 : vector<2x128xi1>, vector<2x128xf32>
    %c0_16 = arith.constant 0 : index
    %c0_17 = arith.constant 0 : index
    %41 = vector.load %arg3[%c0_16, %c0_17] : memref<2x128xf32, #tpu.memory_space<vmem>>, vector<2x128xf32>
    tpu.vector_store %arg3[%c0_16, %c0_17], %40 {strides = array<i32>} : memref<2x128xf32, #tpu.memory_space<vmem>>, vector<2x128xf32>,
    return
  }
  func.func @transform_0(%arg0: i32) -> (i32, i32) {
    %c0_i32 = arith.constant 0 : i32
    %c0_i32_0 = arith.constant 0 : i32
    return %arg0, %c0_i32 : i32, i32
  }
  func.func @transform_1(%arg0: i32) -> (i32, i32) {
    %c0_i32 = arith.constant 0 : i32
    %c0_i32_0 = arith.constant 0 : i32
    %c0_i32_1 = arith.constant 0 : i32
    return %c0_i32, %c0_i32_0 : i32, i32
  }
  func.func @transform_2(%arg0: i32) -> (i32, i32) {
    %c0_i32 = arith.constant 0 : i32
    %c0_i32_0 = arith.constant 0 : i32
    return %arg0, %c0_i32 : i32, i32
  }
}

</mosaic_0001>

<bundles_post_ra>
// kernel: mlp_forward.1
= control target key start
LH: loop header
LB: loop body
LE: loop exit
PB: predicated region body
PF: predicated region fallthrough
CT: control target
= control target key end

     0   :  { %7 = vsyncpa [#allocation3], 0  ;;  %s276_s0 = inlined_call_operand.hbm [shape: f32[2,16], index: 0, kind: input, shape index: {}]   ;;  %s277_s1 = inlined_call_operand.hbm [shape: f32[280,128], index: 1, kind: input, shape index: {}]   ;;  %s278_s2 = inlined_call_operand.vmem [shape: f32[2,128], index: 2, kind: output, shape index: {}]  }
   0x1   :  { %s14_s11 = sshll.u32 %s276_s0, 4  ;;  %s15_s11 = int_to_ptr.hbm [resolvable:$true] %s14_s11 }
   0x2   :  { %8 = vsyncpa [#allocation5], 0  ;;  %s245_s12 = smov [#allocation2]   ;;  %s24_s16 = sshll.u32 %s277_s1, 4  ;;  %s25_s16 = int_to_ptr.hbm [resolvable:$true] %s24_s16 }
   0x3   :  { %s16_s13 = sshll.u32 %s245_s12, 4  ;;  %s246_s17 = smov [#allocation4]   ;;  %s17_s13 = int_to_ptr.vmem [resolvable:$true] %s16_s13 }
   0x4   :  { %19 = dma.hbm_to_vmem [thread:$0]  %s15_s11, 32, %s17_s13, [#allocation3]  }
   0x5   :  { %s26_s18 = sshll.u32 %s246_s17, 4  ;;  %s247_s19 = smov 128   ;;  %s27_s18 = int_to_ptr.vmem [resolvable:$true] %s26_s18 }
   0x6   :  { %s248_s20 = smov 8  }
   0x7   :  { %32 = dma.hbm_to_vmem [thread:$0]  %s25_s16, 4480, %s27_s18, [#allocation5], %s247_s19, %s247_s19, %s248_s20  }
   0x8   :  { %241 = dma.done.wait [#allocation3], 32  }
   0x9   :  { %242 = vsyncadd [#allocation3], 4294967264 }
   0xa   :  { %243 = dma.done.wait [#allocation5], 4480  }
   0xb   :  { %244 = vsyncadd [#allocation5], 4294962816  ;;  %v43_v0 = vld [vmem:[#allocation4 + $0x8] sm:$0xff]  ;;  %v42_v1 = vld [vmem:[#allocation4] sm:$0xff]  ;;  %vm80_vm0 = vcmask 130048   ;;  %v149_v44 = vlaneseq  ;;  %vm154_vm2 = vcmask 1041408  }
   0xc   :  { %98 = vmatpush.msra.mxu0 %v43_v0  ;;  %v41_v2 = vld [vmem:[#allocation2] sm:$0x3]  ;;  %v59_v3 = vld [vmem:[#allocation4 + $0x88] sm:$0xff]  ;;  %v58_v4 = vld [vmem:[#allocation4 + $0x80] sm:$0xff] }
   0xd   :  { %106 = vmatpush.msra.mxu1 %v59_v3  ;;  %v57_v5 = vld [vmem:[#allocation4 + $0x78] sm:$0xff]  ;;  %v56_v6 = vld [vmem:[#allocation4 + $0x70] sm:$0xff]  ;;  %v55_v7 = vld [vmem:[#allocation4 + $0x68] sm:$0xff]  ;;  %v150_v45 = vand.u32 127, %v149_v44 }
   0xe   :  { %99 = vmatpush.msra.mxu0 %v42_v1  ;;  %v54_v8 = vld [vmem:[#allocation4 + $0x60] sm:$0xff]  ;;  %v53_v9 = vld [vmem:[#allocation4 + $0x58] sm:$0xff]  ;;  %v52_v10 = vld [vmem:[#allocation4 + $0x50] sm:$0xff] }
   0xf   :  { %177 = vmatmul.msk.f32.vlgmr.msra.gmra.mxu0 %vm80_vm0, %v41_v2  ;;  %107 = vmatpush.msra.mxu1 %v58_v4  ;;  %v51_v11 = vld [vmem:[#allocation4 + $0x48] sm:$0xff]  ;;  %v50_v12 = vld [vmem:[#allocation4 + $0x40] sm:$0xff]  ;;  %v49_v13 = vld [vmem:[#allocation4 + $0x38] sm:$0xff]  ;;  %vm151_vm1 = vcmp.lt.s32.totalorder %v150_v45, 8  ;;  %vm152_vm3 = vcmp.eq.s32.totalorder %v150_v45, 8 }
  0x10   :  { %v48_v14 = vld [vmem:[#allocation4 + $0x30] sm:$0xff]  ;;  %v47_v15 = vld [vmem:[#allocation4 + $0x28] sm:$0xff]  ;;  %v46_v16 = vld [vmem:[#allocation4 + $0x20] sm:$0xff] }
  0x11   :  { %108 = vmatpush.msra.mxu1 %v57_v5  ;;  %v45_v17 = vld [vmem:[#allocation4 + $0x18] sm:$0xff]  ;;  %v44_v18 = vld [vmem:[#allocation4 + $0x10] sm:$0xff]  ;;  %v75_v19 = vld [vmem:[#allocation4 + $0x108] sm:$0xff] }
  0x12   :  { %v74_v20 = vld [vmem:[#allocation4 + $0x100] sm:$0xff]  ;;  %129 = vmatpush.msra.mxu2 %v75_v19  ;;  %v73_v21 = vld [vmem:[#allocation4 + $0xf8] sm:$0xff]  ;;  %v72_v22 = vld [vmem:[#allocation4 + $0xf0] sm:$0xff] }
  0x13   :  { %109 = vmatpush.msra.mxu1 %v56_v6  ;;  %v71_v23 = vld [vmem:[#allocation4 + $0xe8] sm:$0xff]  ;;  %v70_v24 = vld [vmem:[#allocation4 + $0xe0] sm:$0xff]  ;;  %v69_v25 = vld [vmem:[#allocation4 + $0xd8] sm:$0xff] }
  0x14   :  { %130 = vmatpush.msra.mxu2 %v74_v20  ;;  %v68_v26 = vld [vmem:[#allocation4 + $0xd0] sm:$0xff]  ;;  %v67_v27 = vld [vmem:[#allocation4 + $0xc8] sm:$0xff]  ;;  %v66_v28 = vld [vmem:[#allocation4 + $0xc0] sm:$0xff] }
  0x15   :  { %110 = vmatpush.msra.mxu1 %v55_v7  ;;  %v182_v29 = vld [vmem:[#allocation4 + $0x110] ss:$0 sm:$0xff]  ;;  %v65_v33 = vld [vmem:[#allocation4 + $0xb8] sm:$0xff]  ;;  %v63_v35 = vld [vmem:[#allocation4 + $0xa8] sm:$0xff] }
  0x16   :  { %131 = vmatpush.msra.mxu2 %v73_v21  ;;  %v64_v34 = vld [vmem:[#allocation4 + $0xb0] sm:$0xff]  ;;  %v62_v36 = vld [vmem:[#allocation4 + $0xa0] sm:$0xff]  ;;  %v61_v37 = vld [vmem:[#allocation4 + $0x98] sm:$0xff] }
  0x17   :  { %111 = vmatpush.msra.mxu1 %v54_v8  ;;  %v60_v38 = vld [vmem:[#allocation4 + $0x90] sm:$0xff] }
  0x18   :  { %132 = vmatpush.msra.mxu2 %v72_v22  ;;  %v183_v39 = vld [vmem:[#allocation4 + $0x111] ss:$0 sm:$0xff]  ;;  %v184_v46 = vld [vmem:[#allocation4 + $0x112] ss:$0 sm:$0xff] }
  0x19   :  { %112 = vmatpush.msra.mxu1 %v53_v9 }
  0x1a   :  { %133 = vmatpush.msra.mxu2 %v71_v23 }
  0x1b   :  { %113 = vmatpush.msra.mxu1 %v52_v10 }
  0x1c   :  { %134 = vmatpush.msra.mxu2 %v70_v24 }
  0x1d   :  { %114 = vmatpush.msra.mxu1 %v51_v11 }
  0x1e   :  { %135 = vmatpush.msra.mxu2 %v69_v25 }
  0x1f   :  { %115 = vmatpush.msra.mxu1 %v50_v12 }
  0x20   :  { %136 = vmatpush.msra.mxu2 %v68_v26 }
  0x21   :  { %116 = vmatpush.msra.mxu1 %v49_v13 }
  0x22   :  { %137 = vmatpush.msra.mxu2 %v67_v27 }
  0x23   :  { %117 = vmatpush.msra.mxu1 %v48_v14 }
  0x24   :  { %138 = vmatpush.msra.mxu2 %v66_v28 }
  0x25   :  { %118 = vmatpush.msra.mxu1 %v47_v15 }
  0x26   :  { %139 = vmatpush.msra.mxu2 %v65_v33 }
  0x27   :  { %119 = vmatpush.msra.mxu1 %v46_v16 }
  0x28   :  { %140 = vmatpush.msra.mxu2 %v64_v34 }
  0x29   :  { %120 = vmatpush.msra.mxu1 %v45_v17 }
  0x2a   :  { %141 = vmatpush.msra.mxu2 %v63_v35 }
  0x2b   :  { %121 = vmatpush.msra.mxu1 %v44_v18 }
  0x2c   :  { %142 = vmatpush.msra.mxu2 %v62_v36 }
  0x2e   :  { %143 = vmatpush.msra.mxu2 %v61_v37 }
  0x30   :  { %144 = vmatpush.msra.mxu2 %v60_v38 }
  0x8c   :  { %v101_v30 = vpop.f32.mrf.mxu0 }
  0x8d   :  { %v102_v31 = vadd.f32 %v182_v29, %v101_v30 }
  0x8f   :  { %185 = vtanh.f32 %v102_v31 }
  0x95   :  { %v186_v32 = vpop.eup %185 }
  0x96   :  { %122 = vmatmul.f32.vlgmr.msra.gmra.mxu1 %v186_v32 }
 0x113   :  { %v123_v40 = vpop.f32.mrf.mxu1 }
 0x114   :  { %v124_v41 = vadd.f32 %v183_v39, %v123_v40 }
 0x116   :  { %v126_v42 = vadd.f32 %v186_v32, %v124_v41 }
 0x118   :  { %187 = vtanh.f32 %v126_v42 }
 0x11e   :  { %v188_v43 = vpop.eup %187 }
 0x11f   :  { %145 = vmatmul.f32.vlgmr.msra.gmra.mxu2 %v188_v43 }
 0x1a2   :  { %v146_v47 = vpop.f32.mrf.mxu2 }
 0x1a3   :  { %v147_v48 = vadd.f32 %v184_v46, %v146_v47 }
 0x1a5   :  { %v153_v49 = vsel %vm151_vm1, %v147_v48, -inf  ;;  %v168_v61 = vsel %vm152_vm3, %v147_v48, 0.0 }
 0x1a6   :  { %v155_v50 = vsel %vm154_vm2, %v153_v49, -inf }
 0x1a7   :  { %156 = vmax.xlane.f32.xlu0 %v155_v50 }
 0x21a   :  { %v157_v51 = vpop.xlane.xlu0 %156 }
 0x21b   :  { %v158_v52 = vsub.f32 %v147_v48, %v157_v51 }
 0x21d   :  { %v159_v53 = vsel %vm151_vm1, %v158_v52, -inf }
 0x21e   :  { %v160_v54 = vmul.f32 1.442695, %v159_v53 }
 0x220   :  { %189 = vpow2.f32 %v160_v54 }
 0x226   :  { %v190_v55 = vpop.eup %189 }
 0x227   :  { %v162_v56 = vsel %vm154_vm2, %v190_v55, 0.0 }
 0x228   :  { %163 = vadd.xlane.f32.xlu0 %v162_v56 }
 0x29b   :  { %v164_v57 = vpop.xlane.xlu0 %163 }
 0x29c   :  { %191 = vlog2.f32 %v164_v57 }
 0x2a2   :  { %v192_v58 = vpop.eup %191 }
 0x2a3   :  { %v166_v59 = vmul.f32 0.6931472, %v192_v58 }
 0x2a5   :  { %v167_v60 = vsub.f32 %v158_v52, %v166_v59 }
 0x2a7   :  { %v169_v62 = vsel %vm151_vm1, %v167_v60, %v168_v61 }
 0x2a8   :  { %170 = vst [vmem:[%s278_s2] sm:$0x3] %v169_v62 }
 0x2a9   :  { %175 = vsyncpa [#allocation3], 1 }
 0x2aa   :  { %176 = vsyncpa [#allocation5], 1 }

</bundles_post_ra>
